<compile_context>
chip_gen: v6e
topology: v6e:2x2x1
jax: 0.10.0
libtpu: 0.0.40
codegen_flags: <defaults>
</compile_context>

<pallas_src>
import jax
import jax.numpy as jnp
from jax.experimental import pallas as pl
from jax.experimental.pallas import tpu as pltpu


def _bmm_kernel(a_ref, b_ref, o_ref):
    # a_ref: (1, G, tm, K) bf16, b_ref: (1, G, K, N) bf16, o_ref: (1, tm, G*N) f32
    G = a_ref.shape[1]
    accs = []
    for g in range(G):  # G is small & static (unrolled)
        accs.append(
            jnp.dot(a_ref[0, g], b_ref[0, g], preferred_element_type=jnp.float32)
        )
    # Fuse the G head results along lanes -> one unmasked, 128-lane-dense store.
    o_ref[0] = jnp.concatenate(accs, axis=-1).astype(o_ref.dtype)


def batched_matmul(a, b, *, tm=None, group=2, compute_dtype=jnp.bfloat16):
    """a: [B, H, M, K], b: [B, H, K, N] -> [B, H, M, N] (torch.matmul semantics)."""
    B, H, M, K = a.shape
    B2, H2, K2, N = b.shape
    assert (B, H, K) == (B2, H2, K2)

    out_dtype = a.dtype
    BH = B * H
    G = group if (BH % group == 0) else 1     # fall back to no grouping
    n_groups = BH // G
    if tm is None:
        tm = M                                # full-M tile: VMEM cost is tiny here

    # bf16 compute inputs (f32 accumulation on the MXU) - halves HBM bytes too.
    a3 = a.astype(compute_dtype).reshape(n_groups, G, M, K)
    b3 = b.astype(compute_dtype).reshape(n_groups, G, K, N)

    grid = (n_groups, pl.cdiv(M, tm))

    cost = pl.CostEstimate(
        flops=2 * BH * M * K * N,
        transcendentals=0,
        bytes_accessed=(a3.size * a3.dtype.itemsize
                        + b3.size * b3.dtype.itemsize
                        + BH * M * N * jnp.dtype(out_dtype).itemsize),
    )

    out = pl.pallas_call(
        _bmm_kernel,
        out_shape=jax.ShapeDtypeStruct((n_groups, M, G * N), out_dtype),
        grid_spec=pltpu.PrefetchScalarGridSpec(
            num_scalar_prefetch=0,
            grid=grid,
            in_specs=[
                pl.BlockSpec((1, G, tm, K), lambda g, i: (g, 0, i, 0)),
                # b's block index is constant across the inner M axis -> re-DMA elided
                pl.BlockSpec((1, G, K, N), lambda g, i: (g, 0, 0, 0)),
            ],
            out_specs=pl.BlockSpec((1, tm, G * N), lambda g, i: (g, i, 0)),
        ),
        compiler_params=pltpu.CompilerParams(
            dimension_semantics=("parallel", "parallel"),
        ),
        cost_estimate=cost,
    )(a3, b3)

    # Layout plumbing only: (n_groups, M, G*N) -> (B, H, M, N)
    out = out.reshape(n_groups, M, G, N).transpose(0, 2, 1, 3).reshape(B, H, M, N)
    return out


if __name__ == "__main__":
    # Small shapes consistent with the module:
    # x263: [1, 12, S, S], x251: [1, 12, S, D]  (original S=384, D=64; here S=128)
    B, H, S, D = 1, 12, 128, 64
    key = jax.random.PRNGKey(0)
    k1, k2 = jax.random.split(key)
    x263 = jax.random.normal(k1, (B, H, S, S), dtype=jnp.float32)
    x251 = jax.random.normal(k2, (B, H, S, D), dtype=jnp.float32)

    out = batched_matmul(x263, x251)
    jax.block_until_ready(out)

    # Correctness check against a reference computed at the same (bf16-input,
    # f32-accumulate) precision the kernel uses.
    ref = jnp.matmul(
        x263.astype(jnp.bfloat16).astype(jnp.float32),
        x251.astype(jnp.bfloat16).astype(jnp.float32),
        precision=jax.lax.Precision.HIGHEST,
    )
    assert out.shape == (B, H, S, D)
    assert jnp.allclose(out, ref, atol=1e-2, rtol=1e-2)

    print("KERNEL_OK")
</pallas_src>

<mosaic_0001>
module attributes {stable_mosaic.version = 11 : i64} {
  func.func @_bmm_kernel(%arg0: i32, %arg1: i32, %arg2: memref<1x2x128x128xbf16, #tpu.memory_space<vmem>>, %arg3: memref<1x2x128x64xbf16, #tpu.memory_space<vmem>>, %arg4: memref<1x128x128xf32, #tpu.memory_space<vmem>>) attributes {dimension_semantics = [#tpu.dimension_semantics<parallel>, #tpu.dimension_semantics<parallel>], iteration_bounds = array<i64: 6, 1>, scalar_prefetch = 0 : i64, scratch_operands = 0 : i64, tpu.core_type = #tpu.core_type<tc>, window_params = [{transform_indices = @transform_0, window_bounds = array<i64: 1, 2, 128, 128>}, {transform_indices = @transform_1, window_bounds = array<i64: 1, 2, 128, 64>}, {transform_indices = @transform_2, window_bounds = array<i64: 1, 128, 128>}]} {
    %c0 = arith.constant 0 : index
    %c0_0 = arith.constant 0 : index
    %c0_1 = arith.constant 0 : index
    %c0_2 = arith.constant 0 : index
    %0 = vector.load %arg2[%c0, %c0_0, %c0_1, %c0_2] : memref<1x2x128x128xbf16, #tpu.memory_space<vmem>>, vector<1x1x128x128xbf16>
    %1 = vector.shape_cast %0 : vector<1x1x128x128xbf16> to vector<128x128xbf16>
    %c0_3 = arith.constant 0 : index
    %c0_4 = arith.constant 0 : index
    %c0_5 = arith.constant 0 : index
    %c0_6 = arith.constant 0 : index
    %2 = vector.load %arg3[%c0_3, %c0_4, %c0_5, %c0_6] : memref<1x2x128x64xbf16, #tpu.memory_space<vmem>>, vector<1x1x128x64xbf16>
    %3 = vector.shape_cast %2 : vector<1x1x128x64xbf16> to vector<128x64xbf16>
    %cst = arith.constant dense<0.000000e+00> : vector<128x64xf32>
    %4 = tpu.matmul %1, %3, %cst {dimension_numbers = #tpu.dot_dimension_numbers<[1], [0], [0], [1], [0, 0, 1, 1], [], []>} : vector<128x128xbf16>, vector<128x64xbf16>, vector<128x64xf32> -> vector<128x64xf32>
    %c0_7 = arith.constant 0 : index
    %c1 = arith.constant 1 : index
    %c0_8 = arith.constant 0 : index
    %c0_9 = arith.constant 0 : index
    %5 = vector.load %arg2[%c0_7, %c1, %c0_8, %c0_9] : memref<1x2x128x128xbf16, #tpu.memory_space<vmem>>, vector<1x1x128x128xbf16>
    %6 = vector.shape_cast %5 : vector<1x1x128x128xbf16> to vector<128x128xbf16>
    %c0_10 = arith.constant 0 : index
    %c1_11 = arith.constant 1 : index
    %c0_12 = arith.constant 0 : index
    %c0_13 = arith.constant 0 : index
    %7 = vector.load %arg3[%c0_10, %c1_11, %c0_12, %c0_13] : memref<1x2x128x64xbf16, #tpu.memory_space<vmem>>, vector<1x1x128x64xbf16>
    %8 = vector.shape_cast %7 : vector<1x1x128x64xbf16> to vector<128x64xbf16>
    %cst_14 = arith.constant dense<0.000000e+00> : vector<128x64xf32>
    %9 = tpu.matmul %6, %8, %cst_14 {dimension_numbers = #tpu.dot_dimension_numbers<[1], [0], [0], [1], [0, 0, 1, 1], [], []>} : vector<128x128xbf16>, vector<128x64xbf16>, vector<128x64xf32> -> vector<128x64xf32>
    %10 = tpu.concatenate %4, %9 in 1 : vector<128x64xf32>, vector<128x64xf32> -> vector<128x128xf32>
    %c0_15 = arith.constant 0 : index
    %c0_16 = arith.constant 0 : index
    %c0_17 = arith.constant 0 : index
    %11 = vector.load %arg4[%c0_15, %c0_16, %c0_17] : memref<1x128x128xf32, #tpu.memory_space<vmem>>, vector<1x128x128xf32>
    %12 = vector.shape_cast %11 : vector<1x128x128xf32> to vector<128x128xf32>
    %13 = vector.shape_cast %10 : vector<128x128xf32> to vector<1x128x128xf32>
    tpu.vector_store %arg4[%c0_15, %c0_16, %c0_17], %13 {strides = array<i32>} : memref<1x128x128xf32, #tpu.memory_space<vmem>>, vector<1x128x128xf32>,
    return
  }
  func.func @transform_0(%arg0: i32, %arg1: i32) -> (i32, i32, i32, i32) {
    %c0_i32 = arith.constant 0 : i32
    %c0_i32_0 = arith.constant 0 : i32
    %c0_i32_1 = arith.constant 0 : i32
    return %arg0, %c0_i32, %arg1, %c0_i32_0 : i32, i32, i32, i32
  }
  func.func @transform_1(%arg0: i32, %arg1: i32) -> (i32, i32, i32, i32) {
    %c0_i32 = arith.constant 0 : i32
    %c0_i32_0 = arith.constant 0 : i32
    %c0_i32_1 = arith.constant 0 : i32
    %c0_i32_2 = arith.constant 0 : i32
    return %arg0, %c0_i32, %c0_i32_0, %c0_i32_1 : i32, i32, i32, i32
  }
  func.func @transform_2(%arg0: i32, %arg1: i32) -> (i32, i32, i32) {
    %c0_i32 = arith.constant 0 : i32
    %c0_i32_0 = arith.constant 0 : i32
    return %arg0, %arg1, %c0_i32 : i32, i32, i32
  }
}

</mosaic_0001>

<bundles_post_ra>
// kernel: tpu_custom_call.1
= control target key start
LH: loop header
LB: loop body
LE: loop exit
PB: predicated region body
PF: predicated region fallthrough
CT: control target
= control target key end

     0   :  { %7 = vsyncpa [#allocation3], 0  ;;  %s1423_s0 = inlined_call_operand.vmem [shape: bf16[6,2,128,128], index: 0, kind: input, shape index: {}]   ;;  %s1424_s1 = inlined_call_operand.vmem [shape: bf16[6,2,128,64], index: 1, kind: input, shape index: {}]   ;;  %s1425_s2 = inlined_call_operand.hbm [shape: f32[6,128,128], index: 2, kind: output, shape index: {}]  }
   0x1   :  { %9 = vsyncpa [#allocation3 + $0x1], 0  ;;  %s1215_s9 = smov 0   ;;  %s1217_s10 = smov 0  }
   0x2   :  { %s1219_s11 = smov 0   ;;  %s1221_s12 = smov 0  }
   0x3   :  { %s1223_s13 = smov 0   ;;  %s1225_s14 = smov 0  }
   0x4 LB: > { %s850_s15 = sadd.s32 4294967295, %s1194_s14   ;;  %s851_s16 = sadd.s32 4294967294, %s1194_s14   ;;  %s1194_s14 = sphi %s1225_s14, %s15_s14   ;;  %s1190_s13 = sphi %s1223_s13, %s1432_s13   ;;  %s1186_s12 = sphi %s1221_s12, %s1431_s12   ;;  %s1182_s11 = sphi %s1219_s11, %s1430_s11   ;;  %s1178_s10 = sphi %s1217_s10, %s1429_s10   ;;  %s1174_s9 = sphi %s1215_s9, %s1428_s9  }
   0x5   : > { %s27_s17 = sadd.s32 1, %s1190_s13  ;;  %s90_s18 = sadd.s32 1, %s1182_s11 }
   0x6   : > { %p29_p0 = scmp.ge.s32.totalorder %s27_s17, 6  ;;  %p100_p1 = scmp.ne.s32.totalorder %s1182_s11, %s1178_s10 }
   0x7   : > { %p101_p2 = scmp.eq.s32.totalorder %s850_s15, 5  ;;  %p106_p3 = scmp.ne.s32.totalorder %s1178_s10, %s1174_s9 }
   0x8   : > { %s1434_s17 = smov (%p29_p0, %s27_s17), 0  ;;  %p107_p5 = scmp.eq.s32.totalorder %s851_s16, 5 }
   0x9   : > { %p1255_p4 = por %p101_p2, %p100_p1  ;;  %s85_s20 = ssub.s32 %s1190_s13, %s1434_s17 }
   0xa   : > { %p854_p6 = scmp.ge.s32.totalorder %s1194_s14, 1  ;;  %p88_p7 = scmp.eq.s32.totalorder %s85_s20, 0 }
   0xb   : > { %p1262_p8 = por %p107_p5, %p106_p3  ;;  %p146_p9 = scmp.lt.s32.totalorder %s1194_s14, 7 }
   0xc   : > { %s1268_s22 = scalar_select %p88_p7, %s1182_s11, %s90_s18  }
   0xd   : > { %p147_p10 = pnand %p854_p6, %p146_p9 }
   0xe   : > { %p178_p11 = scmp.lt.s32.totalorder (!%p147_p10), %s1186_s12, 5  ;;  %s1196_s3 = smov (!%p147_p10), 64  }
   0xf   : > { %150 = sbr.rel (%p147_p10) target bundleno = 414 (0x19e), region = 28  ;;  %s174_s4 = sand.u32 (!%p147_p10), 1, %s1178_s10  }
  0x10   : > { %s855_s5 = sshll.u32 (!%p147_p10), %s174_s4, 7  ;;  %s931_s7 = sshll.u32 (!%p147_p10), %s1186_s12, 11 }
  0x11   : > { %s1334_s6 = scalar_lea.vmem (!%p147_p10), [#allocation2], %s855_s5  ;;  %s1370_s18 = scalar_lea.hbm (!%p147_p10), %s1425_s2, %s931_s7 }
  0x12   : > { %s759_s8 = sshll.u32 (!%p147_p10), %s1334_s6, 4  ;;  %s1372_s8 = int_to_ptr.vmem [resolvable:$true] %s759_s8 }
  0x13   : > { %s1118_s20 = scalar_lea.vmem (!%p147_p10), %s1372_s8, 2048 }
  0x14   : > { %s179_s23 = scalar_select %p178_p11, %s1186_s12, 5  ;;  %vm710_vm0 = vcmask 523264  }
  0x15   : > { %s1378_s12 = scalar_lea.sflag [#allocation3], %s174_s4  ;;  %p1119_p12 = scmp.ne.s32.totalorder %s1372_s8, %s1118_s20 }
  0x16   : > { %s929_s24 = sshll.u32 %s179_s23, 7  ;;  %s1197_s23 = smov [#allocation2]  }
  0x17   : > { %s1275_s27 = scalar_lea.vmem %s1424_s1, %s929_s24  ;;  %s1283_s30 = scalar_lea.vmem %s1423_s0, %s929_s24 }
  0x18   : > { %v1086_v0 = vld [vmem:[%s1275_s27 + $0x78] sm:$0xff]   ;;  %v1087_v1 = vld [vmem:[%s1275_s27 + $0x70] sm:$0xff]   ;;  %v1088_v2 = vld [vmem:[%s1275_s27 + $0x68] sm:$0xff]   ;;  %p1120_p13 = pnand %p1119_p12, %p1255_p4  ;;  %s1122_s24 = sshll.u32 %s1197_s23, 4  ;;  %s1123_s24 = int_to_ptr.vmem [resolvable:$false] %s1122_s24 }
  0x19   : > { %996 = vmatprep.subr.bf16.mxu1 %v1086_v0  ;;  %v1089_v3 = vld [vmem:[%s1275_s27 + $0x60] sm:$0xff]   ;;  %v1090_v5 = vld [vmem:[%s1275_s27 + $0x58] sm:$0xff]   ;;  %v1091_v6 = vld [vmem:[%s1275_s27 + $0x50] sm:$0xff]   ;;  %s1124_s25 = scalar_lea.vmem %s1123_s24, 4096  ;;  %p1125_p1 = scmp.lt.s32.totalorder %s1372_s8, %s1123_s24 }
  0x1a   : > { %997 = vmatpush3.bf16.msra.mxu1 %v1086_v0  ;;  %v1094_v4 = vld [vmem:[%s1283_s30 + $0x40] sm:$0xff]   ;;  %v1102_v7 = vld [vmem:[%s1275_s27 + $0x38] sm:$0xff]   ;;  %v1103_v8 = vld [vmem:[%s1275_s27 + $0x30] sm:$0xff]   ;;  %p1121_p0 = pneg %p1120_p13  ;;  %p1126_p2 = scmp.lt.s32.totalorder %s1124_s25, %s1118_s20 }
  0x1b   : > { %998 = vmatprep.subr.bf16.mxu1 %v1087_v1  ;;  %1012 = vmatprep.mubr.bf16.mxu1 %v1094_v4  ;;  %v1092_v9 = vld [vmem:[%s1275_s27 + $0x48] sm:$0xff]   ;;  %v1093_v11 = vld [vmem:[%s1275_s27 + $0x40] sm:$0xff]   ;;  %v1106_v14 = vld [vmem:[%s1275_s27 + $0x18] sm:$0xff]  }
  0x1c   : > { %964 = vmatprep.subr.bf16.mxu0 %v1102_v7  ;;  %v1104_v10 = vld [vmem:[%s1275_s27 + $0x28] sm:$0xff]   ;;  %v1105_v12 = vld [vmem:[%s1275_s27 + $0x20] sm:$0xff]   ;;  %v1096_v16 = vld [vmem:[%s1283_s30 + $0x50] sm:$0xff]   ;;  %p1127_p3 = por %p1126_p2, %p1125_p1 }
  0x1d   : > { %965 = vmatpush3.bf16.msra.mxu0 %v1102_v7  ;;  %v1110_v13 = vld [vmem:[%s1283_s30] sm:$0xff]   ;;  %v1095_v15 = vld [vmem:[%s1283_s30 + $0x48] sm:$0xff]   ;;  %v1107_v17 = vld [vmem:[%s1275_s27 + $0x10] sm:$0xff]  }
  0x1e   : > { %999 = vmatpush3.bf16.msra.mxu1 %v1087_v1  ;;  %966 = vmatprep.subr.bf16.mxu0 %v1103_v8  ;;  %v1108_v18 = vld [vmem:[%s1275_s27 + $0x8] sm:$0xff]   ;;  %v1097_v19 = vld [vmem:[%s1283_s30 + $0x58] sm:$0xff]   ;;  %v1098_v20 = vld [vmem:[%s1283_s30 + $0x60] sm:$0xff]   ;;  %p1128_p5 = pnand %p1127_p3, %p1121_p0 }
  0x1f   : > { %1000 = vmatprep.subr.bf16.mxu1 %v1088_v2  ;;  %980 = vmatprep.mubr.bf16.mxu0 %v1110_v13  ;;  %v1109_v21 = vld [vmem:[%s1275_s27] sm:$0xff]   ;;  %v1099_v22 = vld [vmem:[%s1283_s30 + $0x68] sm:$0xff]   ;;  %v1100_v24 = vld [vmem:[%s1283_s30 + $0x70] sm:$0xff]  }
  0x20   : > { %v1111_v23 = vld [vmem:[%s1283_s30 + $0x8] sm:$0xff]   ;;  %v1112_v25 = vld [vmem:[%s1283_s30 + $0x10] sm:$0xff]   ;;  %v1101_v26 = vld [vmem:[%s1283_s30 + $0x78] sm:$0xff]  }
  0x21   : > { %967 = vmatpush3.bf16.msra.mxu0 %v1103_v8  ;;  %v1113_v27 = vld [vmem:[%s1283_s30 + $0x18] sm:$0xff]   ;;  %v1114_v28 = vld [vmem:[%s1283_s30 + $0x20] sm:$0xff]   ;;  %v1115_v29 = vld [vmem:[%s1283_s30 + $0x28] sm:$0xff]  }
  0x22   : > { %1001 = vmatpush3.bf16.msra.mxu1 %v1088_v2  ;;  %968 = vmatprep.subr.bf16.mxu0 %v1104_v10  ;;  %v1116_v30 = vld [vmem:[%s1283_s30 + $0x30] sm:$0xff]   ;;  %v1117_v31 = vld [vmem:[%s1283_s30 + $0x38] sm:$0xff]  }
  0x23   : > { %1002 = vmatprep.subr.bf16.mxu1 %v1089_v3 }
  0x25   : > { %969 = vmatpush3.bf16.msra.mxu0 %v1104_v10 }
  0x26   : > { %1003 = vmatpush3.bf16.msra.mxu1 %v1089_v3  ;;  %970 = vmatprep.subr.bf16.mxu0 %v1105_v12 }
  0x27   : > { %1004 = vmatprep.subr.bf16.mxu1 %v1090_v5 }
  0x29   : > { %971 = vmatpush3.bf16.msra.mxu0 %v1105_v12 }
  0x2a   : > { %1005 = vmatpush3.bf16.msra.mxu1 %v1090_v5  ;;  %972 = vmatprep.subr.bf16.mxu0 %v1106_v14 }
  0x2b   : > { %1006 = vmatprep.subr.bf16.mxu1 %v1091_v6 }
  0x2d   : > { %973 = vmatpush3.bf16.msra.mxu0 %v1106_v14 }
  0x2e   : > { %1007 = vmatpush3.bf16.msra.mxu1 %v1091_v6  ;;  %974 = vmatprep.subr.bf16.mxu0 %v1107_v17 }
  0x2f   : > { %1008 = vmatprep.subr.bf16.mxu1 %v1092_v9 }
  0x31   : > { %975 = vmatpush3.bf16.msra.mxu0 %v1107_v17 }
  0x32   : > { %1009 = vmatpush3.bf16.msra.mxu1 %v1092_v9  ;;  %976 = vmatprep.subr.bf16.mxu0 %v1108_v18 }
  0x33   : > { %1010 = vmatprep.subr.bf16.mxu1 %v1093_v11 }
  0x35   : > { %977 = vmatpush3.bf16.msra.mxu0 %v1108_v18 }
  0x36   : > { %1011 = vmatpush3.bf16.msra.mxu1 %v1093_v11  ;;  %978 = vmatprep.subr.bf16.mxu0 %v1109_v21 }
  0x39   : > { %1013 = vmatmul.mubr.bf16.vlgmr.msra.gmra.mxu1 %v1095_v15  ;;  %979 = vmatpush3.bf16.msra.mxu0 %v1109_v21 }
  0x3a   : > { %1016 = vmatprep.mubr.bf16.mxu1 %v1096_v16 }
  0x3c   : > { %981 = vmatmul.mubr.bf16.vlgmr.msra.gmra.mxu0 %v1111_v23 }
  0x3d   : > { %984 = vmatprep.mubr.bf16.mxu0 %v1112_v25 }
  0x41   : > { %1017 = vmatmul.mubr.bf16.gmra.mxu1 %v1097_v19 }
  0x42   : > { %1020 = vmatprep.mubr.bf16.mxu1 %v1098_v20 }
  0x44   : > { %985 = vmatmul.mubr.bf16.gmra.mxu0 %v1113_v27 }
  0x45   : > { %988 = vmatprep.mubr.bf16.mxu0 %v1114_v28 }
  0x49   : > { %1021 = vmatmul.mubr.bf16.gmra.mxu1 %v1099_v22 }
  0x4a   : > { %1024 = vmatprep.mubr.bf16.mxu1 %v1100_v24 }
  0x4c   : > { %989 = vmatmul.mubr.bf16.gmra.mxu0 %v1115_v29 }
  0x4d   : > { %992 = vmatprep.mubr.bf16.mxu0 %v1116_v30 }
  0x51   : > { %1025 = vmatmul.mubr.bf16.gmra.mxu1 %v1101_v26 }
  0x54   : > { %993 = vmatmul.mubr.bf16.gmra.mxu0 %v1117_v31 }
  0xf9   : > { %v1014_v32 = vpop.f32.mrf.mxu1 }
  0xfa   : > { %666 = vrot.lane.b32.xlu1 %v1014_v32, %s1196_s3 }
  0xfb   : > { %v583_v33 = vpop.f32.mrf.mxu1 }
  0xfc   : > { %662 = vrot.lane.b32.xlu0 %v583_v33, %s1196_s3  ;;  %v982_v48 = vpop.f32.mrf.mxu0 }
  0xfd   : > { %v1015_v34 = vpop.f32.mrf.mxu1 }
  0xfe   : > { %668 = vrot.lane.b32.xlu1 %v1015_v34, %s1196_s3  ;;  %v356_v49 = vpop.f32.mrf.mxu0 }
  0xff   : > { %v586_v35 = vpop.f32.mrf.mxu1 }
 0x100   : > { %664 = vrot.lane.b32.xlu0 %v586_v35, %s1196_s3  ;;  %v983_v50 = vpop.f32.mrf.mxu0 }
 0x101   : > { %v1018_v36 = vpop.f32.mrf.mxu1 }
 0x102   : > { %v359_v51 = vpop.f32.mrf.mxu0 }
 0x103   : > { %v599_v37 = vpop.f32.mrf.mxu1 }
 0x104   : > { %674 = vrot.lane.b32.xlu0 %v1018_v36, %s1196_s3  ;;  %v986_v52 = vpop.f32.mrf.mxu0 }
 0x105   : > { %v1019_v38 = vpop.f32.mrf.mxu1 }
 0x106   : > { %676 = vrot.lane.b32.xlu1 %v1019_v38, %s1196_s3  ;;  %v372_v53 = vpop.f32.mrf.mxu0 }
 0x107   : > { %v602_v39 = vpop.f32.mrf.mxu1 }
 0x108   : > { %670 = vrot.lane.b32.xlu0 %v599_v37, %s1196_s3  ;;  %v987_v54 = vpop.f32.mrf.mxu0 }
 0x109   : > { %v1022_v40 = vpop.f32.mrf.mxu1 }
 0x10a   : > { %672 = vrot.lane.b32.xlu1 %v602_v39, %s1196_s3  ;;  %v375_v55 = vpop.f32.mrf.mxu0 }
 0x10b   : > { %v615_v41 = vpop.f32.mrf.mxu1 }
 0x10c   : > { %682 = vrot.lane.b32.xlu0 %v1022_v40, %s1196_s3  ;;  %v990_v58 = vpop.f32.mrf.mxu0 }
 0x10d   : > { %v1023_v42 = vpop.f32.mrf.mxu1 }
 0x10e   : > { %684 = vrot.lane.b32.xlu1 %v1023_v42, %s1196_s3  ;;  %v388_v63 = vpop.f32.mrf.mxu0 }
 0x10f   : > { %v618_v43 = vpop.f32.mrf.mxu1 }
 0x110   : > { %678 = vrot.lane.b32.xlu0 %v615_v41, %s1196_s3  ;;  %v991_v2 = vpop.f32.mrf.mxu0 }
 0x111   : > { %v1026_v44 = vpop.f32.mrf.mxu1 }
 0x112   : > { %680 = vrot.lane.b32.xlu1 %v618_v43, %s1196_s3  ;;  %v391_v7 = vpop.f32.mrf.mxu0 }
 0x113   : > { %v631_v45 = vpop.f32.mrf.mxu1 }
 0x114   : > { %686 = vrot.lane.b32.xlu0 %v631_v45, %s1196_s3  ;;  %v994_v12 = vpop.f32.mrf.mxu0 }
 0x115   : > { %v1027_v46 = vpop.f32.mrf.mxu1 }
 0x116   : > { %v404_v17 = vpop.f32.mrf.mxu0 }
 0x117   : > { %v634_v47 = vpop.f32.mrf.mxu1 }
 0x118   : > { %690 = vrot.lane.b32.xlu0 %v1026_v44, %s1196_s3  ;;  %688 = vrot.lane.b32.xlu1 %v634_v47, %s1196_s3  ;;  %v995_v22 = vpop.f32.mrf.mxu0 }
 0x11a   : > { %v407_v25 = vpop.f32.mrf.mxu0 }
 0x11c   : > { %692 = vrot.lane.b32.xlu1 %v1027_v46, %s1196_s3 }
 0x16c   : > { %v667_v56 = vpop.permute.xlu1 %666 }
 0x16d   : > { %v713_v57 = vsel %vm710_vm0, %v982_v48, %v667_v56 }
 0x16e   : > { %729 = vst [vmem:[%s1334_s6 + $0x10] sm:$0xff] %v713_v57  ;;  %v663_v59 = vpop.permute.xlu0 %662 }
 0x16f   : > { %v711_v60 = vsel %vm710_vm0, %v356_v49, %v663_v59 }
 0x170   : > { %727 = vst [vmem:[%s1334_s6] sm:$0xff] %v711_v60  ;;  %v669_v61 = vpop.permute.xlu1 %668 }
 0x171   : > { %v714_v62 = vsel %vm710_vm0, %v983_v50, %v669_v61 }
 0x172   : > { %730 = vst [vmem:[%s1334_s6 + $0x18] sm:$0xff] %v714_v62  ;;  %v665_v0 = vpop.permute.xlu0 %664 }
 0x173   : > { %v712_v1 = vsel %vm710_vm0, %v359_v51, %v665_v0 }
 0x174   : > { %728 = vst [vmem:[%s1334_s6 + $0x8] sm:$0xff] %v712_v1 }
 0x176   : > { %v675_v3 = vpop.permute.xlu0 %674 }
 0x177   : > { %v717_v4 = vsel %vm710_vm0, %v986_v52, %v675_v3 }
 0x178   : > { %733 = vst [vmem:[%s1334_s6 + $0x30] sm:$0xff] %v717_v4  ;;  %v677_v5 = vpop.permute.xlu1 %676 }
 0x179   : > { %v718_v6 = vsel %vm710_vm0, %v987_v54, %v677_v5 }
 0x17a   : > { %734 = vst [vmem:[%s1334_s6 + $0x38] sm:$0xff] %v718_v6  ;;  %v671_v8 = vpop.permute.xlu0 %670 }
 0x17b   : > { %v715_v9 = vsel %vm710_vm0, %v372_v53, %v671_v8 }
 0x17c   : > { %731 = vst [vmem:[%s1334_s6 + $0x20] sm:$0xff] %v715_v9  ;;  %v673_v10 = vpop.permute.xlu1 %672 }
 0x17d   : > { %v716_v11 = vsel %vm710_vm0, %v375_v55, %v673_v10 }
 0x17e   : > { %732 = vst [vmem:[%s1334_s6 + $0x28] sm:$0xff] %v716_v11  ;;  %v683_v13 = vpop.permute.xlu0 %682 }
 0x17f   : > { %v721_v14 = vsel %vm710_vm0, %v990_v58, %v683_v13 }
 0x180   : > { %737 = vst [vmem:[%s1334_s6 + $0x50] sm:$0xff] %v721_v14  ;;  %v685_v15 = vpop.permute.xlu1 %684 }
 0x181   : > { %v722_v16 = vsel %vm710_vm0, %v991_v2, %v685_v15 }
 0x182   : > { %738 = vst [vmem:[%s1334_s6 + $0x58] sm:$0xff] %v722_v16  ;;  %v679_v18 = vpop.permute.xlu0 %678 }
 0x183   : > { %v719_v19 = vsel %vm710_vm0, %v388_v63, %v679_v18 }
 0x184   : > { %735 = vst [vmem:[%s1334_s6 + $0x40] sm:$0xff] %v719_v19  ;;  %v681_v20 = vpop.permute.xlu1 %680 }
 0x185   : > { %v720_v21 = vsel %vm710_vm0, %v391_v7, %v681_v20 }
 0x186   : > { %736 = vst [vmem:[%s1334_s6 + $0x48] sm:$0xff] %v720_v21  ;;  %v687_v23 = vpop.permute.xlu0 %686 }
 0x187   : > { %v723_v24 = vsel %vm710_vm0, %v404_v17, %v687_v23 }
 0x188   : > { %739 = vst [vmem:[%s1334_s6 + $0x60] sm:$0xff] %v723_v24 }
 0x18a   : > { %v691_v26 = vpop.permute.xlu0 %690  ;;  %v689_v27 = vpop.permute.xlu1 %688 }
 0x18b   : > { %v725_v28 = vsel %vm710_vm0, %v994_v12, %v691_v26  ;;  %v724_v29 = vsel %vm710_vm0, %v407_v25, %v689_v27 }
 0x18c   : > { %741 = vst [vmem:[%s1334_s6 + $0x70] sm:$0xff] %v725_v28  ;;  %740 = vst [vmem:[%s1334_s6 + $0x68] sm:$0xff] %v724_v29 }
 0x18e   : > { %v693_v30 = vpop.permute.xlu1 %692 }
 0x18f   : > { %v726_v31 = vsel %vm710_vm0, %v995_v22, %v693_v30 }
 0x190   : > { %742 = vst [vmem:[%s1334_s6 + $0x78] sm:$0xff] %v726_v31 }
 0x191   : > { %1131 = shalt.err (!%p1128_p5)
}
 0x192   : > { %s1132_s26 = scalar_lea.hbm %s1370_s18, 2048  ;;  %s1136_s29 = scalar_lea.hbm %s1425_s2, 12288 }
 0x193   : > { %p1133_p6 = scmp.ne.s32.totalorder %s1370_s18, %s1132_s26  ;;  %p1137_p10 = scmp.lt.s32.totalorder %s1370_s18, %s1425_s2 }
 0x194   : > { %p1138_p11 = scmp.lt.s32.totalorder %s1136_s29, %s1132_s26 }
 0x195   : > { %p1134_p7 = pnand %p1133_p6, %p1255_p4 }
 0x196   : > { %p1139_p12 = por %p1138_p11, %p1137_p10 }
 0x197   : > { %p1135_p9 = pneg %p1134_p7 }
 0x199   : > { %p1140_p13 = pnand %p1139_p12, %p1135_p9 }
 0x19b   : > { %1143 = shalt.err (!%p1140_p13)
}
 0x19c   : > { %s1198_s4 = smov 128   ;;  %s1199_s5 = smov 8  }
 0x19d   : > { %1028 = dma.vmem_to_hbm [thread:$0]  (%p1255_p4), %s1372_s8, 2048, %s1370_s18, %s1378_s12, %s1198_s4, %s1198_s4, %s1199_s5  }
 0x19e PF: > { %p1034_p0 = scmp.ge.s32.totalorder %s1194_s14, 2  ;;  %s774_s6 = sand.u32 1, %s1174_s9  }
 0x19f   : > { %s775_s7 = scalar_lea.sflag [#allocation3], %s774_s6 }
 0x1a0   : > { %p1031_p1 = pnand %p1034_p0, %p1262_p8 }
 0x1a2   : > { %p1032_p2 = pneg %p1031_p1 }
 0x1a4   : > { %1169 = dma.done.wait (%p1032_p2), %s775_s7, 2048  }
 0x1a5   : > { %1171 = vsyncadd (%p1032_p2), %s775_s7, 4294965248  ;;  %s15_s14 = sadd.s32 1, %s1194_s14   ;;  %s1428_s9 = smov %s1178_s10 }
 0x1a6   : > { %p12_p3 = scmp.ge.s32.totalorder %s15_s14, 8   ;;  %s1429_s10 = smov %s1182_s11 }
 0x1a7   : > { %s1430_s11 = smov %s1268_s22  ;;  %s1431_s12 = smov %s1190_s13 }
 0x1a8   : > { %s1432_s13 = smov %s1434_s17  ;;  %14 = sbr.rel (!%p12_p3) target bundleno = 4 (0x4), region = 68 }
 0x1ad   :  { %780 = vsyncpa [#allocation3], 1 }
 0x1ae   :  { %782 = vsyncpa [#allocation3 + $0x1], 1 }

</bundles_post_ra>
